<compile_context>
chip_gen: v5e
topology: v5e:2x2
jax: 0.10.0
libtpu: 0.0.40
codegen_flags: <defaults>
</compile_context>

<pallas_src>
import functools
import math

import jax
import jax.numpy as jnp
from jax.experimental import pallas as pl
from jax.experimental.pallas import tpu as pltpu

_LANE = 128  # lane width of the packed batch view


def _round_up(n, m):
    return ((n + m - 1) // m) * m


def lr_kernel(x_ref, w_ref, bias_ref, o_ref, *, num_fields, bits, leaves):
    # x_ref:    (rows, 128) int32  -- bit-packed field indices, batch on (sublane, lane)
    # w_ref:    (F * leaves,) f32  -- SMEM weight table, w[f * leaves + v] = W[f, v]
    # bias_ref: (1,) f32           -- SMEM scalar
    # o_ref:    (rows, 128) f32    -- lane-dense output tile
    packed = x_ref[...]                                     # (rows, 128) int32

    acc = None
    for f in range(num_fields):
        base = f * bits
        # Leaves are SMEM scalars; the binary select tree picks W[f, x_bf]
        # using the index bits (level k selects on bit k).
        level = [w_ref[f * leaves + v] for v in range(leaves)]
        for k in range(bits):
            bit = ((packed >> (base + k)) & 1) == 1         # (rows, 128) bool
            level = [jnp.where(bit, level[2 * j + 1], level[2 * j])
                     for j in range(len(level) // 2)]
        val = level[0]                                      # (rows, 128) f32
        acc = val if acc is None else acc + val             # init from field 0

    # final_activation is None in the reference module -> identity.
    o_ref[...] = acc + bias_ref[0]


def lr_layer_pallas(x, weights, bias, *, block_b=32768):
    """x: (B, F) int; weights: (F, V) float32; bias: (1,) float32 -> (B, 1) float32."""
    B, F = x.shape
    Fw, V = weights.shape
    assert F == Fw, (F, Fw)

    bits = max(1, (V - 1).bit_length())     # bits per field index
    Vp = 1 << bits                          # padded (power-of-two) vocab per field
    # TODO(synk): fall back to an HBM-resident table + DMA gather when these fail.
    assert F * bits <= 32, "packed indices must fit one int32 per example"
    assert F * Vp <= 2048, "select-tree/SMEM path is for small per-field vocabularies"

    # --- wrapper-side prep (one cheap fused pass; no transpose / full-batch pad) ---
    # Pack all F indices of an example into one int32 (fields occupy disjoint bits).
    shifts = jnp.arange(F, dtype=jnp.int32) * jnp.int32(bits)          # (F,)
    xp = jnp.sum(x.astype(jnp.int32) << shifts[None, :], axis=1)       # (B,) int32

    R = pl.cdiv(B, _LANE)                    # rows of the (R, 128) packed view
    if R * _LANE != B:
        xp = jnp.pad(xp, (0, R * _LANE - B))  # only <=127 padded elements (index 0)
    xp2 = xp.reshape(R, _LANE)

    # Tiny weight table -> SMEM (flattened 1D to avoid SMEM 2D padding blowup).
    w_flat = jnp.pad(weights.astype(jnp.float32),
                     ((0, 0), (0, Vp - V))).reshape(F * Vp)
    bias = bias.astype(jnp.float32).reshape((1,))

    # --- tile-size choice: big blocks (amortize ~0.35us/step), but keep >= 2 grid
    # steps when the batch allows so v7x's two TensorCores both get work. ---
    rows = max(8, (block_b // _LANE) // 8 * 8)
    if rows >= R:
        rows = R                              # single block (== full row dim)
        if R > 8:
            rows = _round_up(pl.cdiv(R, 2), 8)  # split into >= 2 blocks
    grid = (pl.cdiv(R, rows),)                # ragged last block: OOB-masked by Pallas

    out = pl.pallas_call(
        functools.partial(lr_kernel, num_fields=F, bits=bits, leaves=Vp),
        out_shape=jax.ShapeDtypeStruct((R, _LANE), jnp.float32),
        grid=grid,
        in_specs=[
            pl.BlockSpec((rows, _LANE), lambda i: (i, 0)),   # packed indices
            pl.BlockSpec(memory_space=pltpu.SMEM),           # weight table (scalars)
            pl.BlockSpec(memory_space=pltpu.SMEM),           # bias
        ],
        out_specs=pl.BlockSpec((rows, _LANE), lambda i: (i, 0)),
        compiler_params=pltpu.CompilerParams(
            dimension_semantics=("parallel",),
        ),
    )(xp2, w_flat, bias)

    return out.reshape(R * _LANE)[:B].reshape(B, 1)


def lr_layer_ref(x, weights, bias):
    """Plain-JAX reference mirroring the PyTorch forward."""
    F = weights.shape[0]
    gathered = jax.vmap(lambda xi: weights[jnp.arange(F), xi])(x)   # (B, F)
    return jnp.sum(gathered, axis=1, keepdims=True) + bias[0]


if __name__ == "__main__":
    key = jax.random.PRNGKey(0)
    F = 4          # number of categorical feature fields
    V = 16         # vocab size per field

    k_w, k1, k2 = jax.random.split(key, 3)
    weights = jax.random.normal(k_w, (F, V), dtype=jnp.float32) * 0.1
    bias = jnp.zeros((1,), dtype=jnp.float32)   # nn.Parameter(torch.zeros(1))

    # (1) small batch -> single grid step (block rows == full row dim)
    B1 = 8
    x1 = jax.random.randint(k1, (B1, F), 0, V, dtype=jnp.int32)
    out1 = jax.block_until_ready(lr_layer_pallas(x1, weights, bias))
    ref1 = lr_layer_ref(x1, weights, bias)
    assert out1.shape == (B1, 1), out1.shape
    assert jnp.allclose(out1, ref1, atol=1e-5, rtol=1e-5), (out1, ref1)

    # (2) multi-block grid + ragged tail (B not a multiple of the tile)
    B2 = 2500
    x2 = jax.random.randint(k2, (B2, F), 0, V, dtype=jnp.int32)
    out2 = jax.block_until_ready(lr_layer_pallas(x2, weights, bias, block_b=1024))
    ref2 = lr_layer_ref(x2, weights, bias)
    assert out2.shape == (B2, 1), out2.shape
    assert jnp.allclose(out2, ref2, atol=1e-5, rtol=1e-5), (out2, ref2)

    print("KERNEL_OK")
</pallas_src>

<mosaic_0001>
module attributes {stable_mosaic.version = 11 : i64} {
  func.func @lr_kernel(%arg0: i32, %arg1: memref<1x128xi32, #tpu.memory_space<vmem>>, %arg2: memref<64xf32, #tpu.memory_space<smem>>, %arg3: memref<1xf32, #tpu.memory_space<smem>>, %arg4: memref<1x128xf32, #tpu.memory_space<vmem>>) attributes {dimension_semantics = [#tpu.dimension_semantics<parallel>], iteration_bounds = array<i64: 1>, scalar_prefetch = 0 : i64, scratch_operands = 0 : i64, tpu.core_type = #tpu.core_type<tc>, window_params = [{transform_indices = @transform_0, window_bounds = array<i64: 1, 128>}, {transform_indices = @transform_1, window_bounds = array<i64: 64>}, {transform_indices = @transform_2, window_bounds = array<i64: 1>}, {transform_indices = @transform_3, window_bounds = array<i64: 1, 128>}]} {
    %c0 = arith.constant 0 : index
    %c0_0 = arith.constant 0 : index
    %0 = vector.load %arg1[%c0, %c0_0] : memref<1x128xi32, #tpu.memory_space<vmem>>, vector<1x128xi32>
    %c0_1 = arith.constant 0 : index
    %1 = memref.load %arg2[%c0_1] : memref<64xf32, #tpu.memory_space<smem>>
    %c1 = arith.constant 1 : index
    %2 = memref.load %arg2[%c1] : memref<64xf32, #tpu.memory_space<smem>>
    %c2 = arith.constant 2 : index
    %3 = memref.load %arg2[%c2] : memref<64xf32, #tpu.memory_space<smem>>
    %c3 = arith.constant 3 : index
    %4 = memref.load %arg2[%c3] : memref<64xf32, #tpu.memory_space<smem>>
    %c4 = arith.constant 4 : index
    %5 = memref.load %arg2[%c4] : memref<64xf32, #tpu.memory_space<smem>>
    %c5 = arith.constant 5 : index
    %6 = memref.load %arg2[%c5] : memref<64xf32, #tpu.memory_space<smem>>
    %c6 = arith.constant 6 : index
    %7 = memref.load %arg2[%c6] : memref<64xf32, #tpu.memory_space<smem>>
    %c7 = arith.constant 7 : index
    %8 = memref.load %arg2[%c7] : memref<64xf32, #tpu.memory_space<smem>>
    %c8 = arith.constant 8 : index
    %9 = memref.load %arg2[%c8] : memref<64xf32, #tpu.memory_space<smem>>
    %c9 = arith.constant 9 : index
    %10 = memref.load %arg2[%c9] : memref<64xf32, #tpu.memory_space<smem>>
    %c10 = arith.constant 10 : index
    %11 = memref.load %arg2[%c10] : memref<64xf32, #tpu.memory_space<smem>>
    %c11 = arith.constant 11 : index
    %12 = memref.load %arg2[%c11] : memref<64xf32, #tpu.memory_space<smem>>
    %c12 = arith.constant 12 : index
    %13 = memref.load %arg2[%c12] : memref<64xf32, #tpu.memory_space<smem>>
    %c13 = arith.constant 13 : index
    %14 = memref.load %arg2[%c13] : memref<64xf32, #tpu.memory_space<smem>>
    %c14 = arith.constant 14 : index
    %15 = memref.load %arg2[%c14] : memref<64xf32, #tpu.memory_space<smem>>
    %c15 = arith.constant 15 : index
    %16 = memref.load %arg2[%c15] : memref<64xf32, #tpu.memory_space<smem>>
    %c0_i32 = arith.constant 0 : i32
    %17 = vector.broadcast %c0_i32 : i32 to vector<1x128xi32>
    %18 = arith.shrsi %0, %17 : vector<1x128xi32>
    %c1_i32 = arith.constant 1 : i32
    %19 = vector.broadcast %c1_i32 : i32 to vector<1x128xi32>
    %20 = arith.andi %18, %19 : vector<1x128xi32>
    %c1_i32_2 = arith.constant 1 : i32
    %21 = vector.broadcast %c1_i32_2 : i32 to vector<1x128xi32>
    %22 = arith.cmpi eq, %20, %21 : vector<1x128xi32>
    %23 = vector.broadcast %2 : f32 to vector<1x128xf32>
    %24 = vector.broadcast %1 : f32 to vector<1x128xf32>
    %25 = arith.select %22, %23, %24 : vector<1x128xi1>, vector<1x128xf32>
    %26 = vector.broadcast %4 : f32 to vector<1x128xf32>
    %27 = vector.broadcast %3 : f32 to vector<1x128xf32>
    %28 = arith.select %22, %26, %27 : vector<1x128xi1>, vector<1x128xf32>
    %29 = vector.broadcast %6 : f32 to vector<1x128xf32>
    %30 = vector.broadcast %5 : f32 to vector<1x128xf32>
    %31 = arith.select %22, %29, %30 : vector<1x128xi1>, vector<1x128xf32>
    %32 = vector.broadcast %8 : f32 to vector<1x128xf32>
    %33 = vector.broadcast %7 : f32 to vector<1x128xf32>
    %34 = arith.select %22, %32, %33 : vector<1x128xi1>, vector<1x128xf32>
    %35 = vector.broadcast %10 : f32 to vector<1x128xf32>
    %36 = vector.broadcast %9 : f32 to vector<1x128xf32>
    %37 = arith.select %22, %35, %36 : vector<1x128xi1>, vector<1x128xf32>
    %38 = vector.broadcast %12 : f32 to vector<1x128xf32>
    %39 = vector.broadcast %11 : f32 to vector<1x128xf32>
    %40 = arith.select %22, %38, %39 : vector<1x128xi1>, vector<1x128xf32>
    %41 = vector.broadcast %14 : f32 to vector<1x128xf32>
    %42 = vector.broadcast %13 : f32 to vector<1x128xf32>
    %43 = arith.select %22, %41, %42 : vector<1x128xi1>, vector<1x128xf32>
    %44 = vector.broadcast %16 : f32 to vector<1x128xf32>
    %45 = vector.broadcast %15 : f32 to vector<1x128xf32>
    %46 = arith.select %22, %44, %45 : vector<1x128xi1>, vector<1x128xf32>
    %c1_i32_3 = arith.constant 1 : i32
    %47 = vector.broadcast %c1_i32_3 : i32 to vector<1x128xi32>
    %48 = arith.shrsi %0, %47 : vector<1x128xi32>
    %c1_i32_4 = arith.constant 1 : i32
    %49 = vector.broadcast %c1_i32_4 : i32 to vector<1x128xi32>
    %50 = arith.andi %48, %49 : vector<1x128xi32>
    %c1_i32_5 = arith.constant 1 : i32
    %51 = vector.broadcast %c1_i32_5 : i32 to vector<1x128xi32>
    %52 = arith.cmpi eq, %50, %51 : vector<1x128xi32>
    %53 = arith.select %52, %28, %25 : vector<1x128xi1>, vector<1x128xf32>
    %54 = arith.select %52, %34, %31 : vector<1x128xi1>, vector<1x128xf32>
    %55 = arith.select %52, %40, %37 : vector<1x128xi1>, vector<1x128xf32>
    %56 = arith.select %52, %46, %43 : vector<1x128xi1>, vector<1x128xf32>
    %c2_i32 = arith.constant 2 : i32
    %57 = vector.broadcast %c2_i32 : i32 to vector<1x128xi32>
    %58 = arith.shrsi %0, %57 : vector<1x128xi32>
    %c1_i32_6 = arith.constant 1 : i32
    %59 = vector.broadcast %c1_i32_6 : i32 to vector<1x128xi32>
    %60 = arith.andi %58, %59 : vector<1x128xi32>
    %c1_i32_7 = arith.constant 1 : i32
    %61 = vector.broadcast %c1_i32_7 : i32 to vector<1x128xi32>
    %62 = arith.cmpi eq, %60, %61 : vector<1x128xi32>
    %63 = arith.select %62, %54, %53 : vector<1x128xi1>, vector<1x128xf32>
    %64 = arith.select %62, %56, %55 : vector<1x128xi1>, vector<1x128xf32>
    %c3_i32 = arith.constant 3 : i32
    %65 = vector.broadcast %c3_i32 : i32 to vector<1x128xi32>
    %66 = arith.shrsi %0, %65 : vector<1x128xi32>
    %c1_i32_8 = arith.constant 1 : i32
    %67 = vector.broadcast %c1_i32_8 : i32 to vector<1x128xi32>
    %68 = arith.andi %66, %67 : vector<1x128xi32>
    %c1_i32_9 = arith.constant 1 : i32
    %69 = vector.broadcast %c1_i32_9 : i32 to vector<1x128xi32>
    %70 = arith.cmpi eq, %68, %69 : vector<1x128xi32>
    %71 = arith.select %70, %64, %63 : vector<1x128xi1>, vector<1x128xf32>
    %c16 = arith.constant 16 : index
    %72 = memref.load %arg2[%c16] : memref<64xf32, #tpu.memory_space<smem>>
    %c17 = arith.constant 17 : index
    %73 = memref.load %arg2[%c17] : memref<64xf32, #tpu.memory_space<smem>>
    %c18 = arith.constant 18 : index
    %74 = memref.load %arg2[%c18] : memref<64xf32, #tpu.memory_space<smem>>
    %c19 = arith.constant 19 : index
    %75 = memref.load %arg2[%c19] : memref<64xf32, #tpu.memory_space<smem>>
    %c20 = arith.constant 20 : index
    %76 = memref.load %arg2[%c20] : memref<64xf32, #tpu.memory_space<smem>>
    %c21 = arith.constant 21 : index
    %77 = memref.load %arg2[%c21] : memref<64xf32, #tpu.memory_space<smem>>
    %c22 = arith.constant 22 : index
    %78 = memref.load %arg2[%c22] : memref<64xf32, #tpu.memory_space<smem>>
    %c23 = arith.constant 23 : index
    %79 = memref.load %arg2[%c23] : memref<64xf32, #tpu.memory_space<smem>>
    %c24 = arith.constant 24 : index
    %80 = memref.load %arg2[%c24] : memref<64xf32, #tpu.memory_space<smem>>
    %c25 = arith.constant 25 : index
    %81 = memref.load %arg2[%c25] : memref<64xf32, #tpu.memory_space<smem>>
    %c26 = arith.constant 26 : index
    %82 = memref.load %arg2[%c26] : memref<64xf32, #tpu.memory_space<smem>>
    %c27 = arith.constant 27 : index
    %83 = memref.load %arg2[%c27] : memref<64xf32, #tpu.memory_space<smem>>
    %c28 = arith.constant 28 : index
    %84 = memref.load %arg2[%c28] : memref<64xf32, #tpu.memory_space<smem>>
    %c29 = arith.constant 29 : index
    %85 = memref.load %arg2[%c29] : memref<64xf32, #tpu.memory_space<smem>>
    %c30 = arith.constant 30 : index
    %86 = memref.load %arg2[%c30] : memref<64xf32, #tpu.memory_space<smem>>
    %c31 = arith.constant 31 : index
    %87 = memref.load %arg2[%c31] : memref<64xf32, #tpu.memory_space<smem>>
    %c4_i32 = arith.constant 4 : i32
    %88 = vector.broadcast %c4_i32 : i32 to vector<1x128xi32>
    %89 = arith.shrsi %0, %88 : vector<1x128xi32>
    %c1_i32_10 = arith.constant 1 : i32
    %90 = vector.broadcast %c1_i32_10 : i32 to vector<1x128xi32>
    %91 = arith.andi %89, %90 : vector<1x128xi32>
    %c1_i32_11 = arith.constant 1 : i32
    %92 = vector.broadcast %c1_i32_11 : i32 to vector<1x128xi32>
    %93 = arith.cmpi eq, %91, %92 : vector<1x128xi32>
    %94 = vector.broadcast %73 : f32 to vector<1x128xf32>
    %95 = vector.broadcast %72 : f32 to vector<1x128xf32>
    %96 = arith.select %93, %94, %95 : vector<1x128xi1>, vector<1x128xf32>
    %97 = vector.broadcast %75 : f32 to vector<1x128xf32>
    %98 = vector.broadcast %74 : f32 to vector<1x128xf32>
    %99 = arith.select %93, %97, %98 : vector<1x128xi1>, vector<1x128xf32>
    %100 = vector.broadcast %77 : f32 to vector<1x128xf32>
    %101 = vector.broadcast %76 : f32 to vector<1x128xf32>
    %102 = arith.select %93, %100, %101 : vector<1x128xi1>, vector<1x128xf32>
    %103 = vector.broadcast %79 : f32 to vector<1x128xf32>
    %104 = vector.broadcast %78 : f32 to vector<1x128xf32>
    %105 = arith.select %93, %103, %104 : vector<1x128xi1>, vector<1x128xf32>
    %106 = vector.broadcast %81 : f32 to vector<1x128xf32>
    %107 = vector.broadcast %80 : f32 to vector<1x128xf32>
    %108 = arith.select %93, %106, %107 : vector<1x128xi1>, vector<1x128xf32>
    %109 = vector.broadcast %83 : f32 to vector<1x128xf32>
    %110 = vector.broadcast %82 : f32 to vector<1x128xf32>
    %111 = arith.select %93, %109, %110 : vector<1x128xi1>, vector<1x128xf32>
    %112 = vector.broadcast %85 : f32 to vector<1x128xf32>
    %113 = vector.broadcast %84 : f32 to vector<1x128xf32>
    %114 = arith.select %93, %112, %113 : vector<1x128xi1>, vector<1x128xf32>
    %115 = vector.broadcast %87 : f32 to vector<1x128xf32>
    %116 = vector.broadcast %86 : f32 to vector<1x128xf32>
    %117 = arith.select %93, %115, %116 : vector<1x128xi1>, vector<1x128xf32>
    %c5_i32 = arith.constant 5 : i32
    %118 = vector.broadcast %c5_i32 : i32 to vector<1x128xi32>
    %119 = arith.shrsi %0, %118 : vector<1x128xi32>
    %c1_i32_12 = arith.constant 1 : i32
    %120 = vector.broadcast %c1_i32_12 : i32 to vector<1x128xi32>
    %121 = arith.andi %119, %120 : vector<1x128xi32>
    %c1_i32_13 = arith.constant 1 : i32
    %122 = vector.broadcast %c1_i32_13 : i32 to vector<1x128xi32>
    %123 = arith.cmpi eq, %121, %122 : vector<1x128xi32>
    %124 = arith.select %123, %99, %96 : vector<1x128xi1>, vector<1x128xf32>
    %125 = arith.select %123, %105, %102 : vector<1x128xi1>, vector<1x128xf32>
    %126 = arith.select %123, %111, %108 : vector<1x128xi1>, vector<1x128xf32>
    %127 = arith.select %123, %117, %114 : vector<1x128xi1>, vector<1x128xf32>
    %c6_i32 = arith.constant 6 : i32
    %128 = vector.broadcast %c6_i32 : i32 to vector<1x128xi32>
    %129 = arith.shrsi %0, %128 : vector<1x128xi32>
    %c1_i32_14 = arith.constant 1 : i32
    %130 = vector.broadcast %c1_i32_14 : i32 to vector<1x128xi32>
    %131 = arith.andi %129, %130 : vector<1x128xi32>
    %c1_i32_15 = arith.constant 1 : i32
    %132 = vector.broadcast %c1_i32_15 : i32 to vector<1x128xi32>
    %133 = arith.cmpi eq, %131, %132 : vector<1x128xi32>
    %134 = arith.select %133, %125, %124 : vector<1x128xi1>, vector<1x128xf32>
    %135 = arith.select %133, %127, %126 : vector<1x128xi1>, vector<1x128xf32>
    %c7_i32 = arith.constant 7 : i32
    %136 = vector.broadcast %c7_i32 : i32 to vector<1x128xi32>
    %137 = arith.shrsi %0, %136 : vector<1x128xi32>
    %c1_i32_16 = arith.constant 1 : i32
    %138 = vector.broadcast %c1_i32_16 : i32 to vector<1x128xi32>
    %139 = arith.andi %137, %138 : vector<1x128xi32>
    %c1_i32_17 = arith.constant 1 : i32
    %140 = vector.broadcast %c1_i32_17 : i32 to vector<1x128xi32>
    %141 = arith.cmpi eq, %139, %140 : vector<1x128xi32>
    %142 = arith.select %141, %135, %134 : vector<1x128xi1>, vector<1x128xf32>
    %143 = arith.addf %71, %142 : vector<1x128xf32>
    %c32 = arith.constant 32 : index
    %144 = memref.load %arg2[%c32] : memref<64xf32, #tpu.memory_space<smem>>
    %c33 = arith.constant 33 : index
    %145 = memref.load %arg2[%c33] : memref<64xf32, #tpu.memory_space<smem>>
    %c34 = arith.constant 34 : index
    %146 = memref.load %arg2[%c34] : memref<64xf32, #tpu.memory_space<smem>>
    %c35 = arith.constant 35 : index
    %147 = memref.load %arg2[%c35] : memref<64xf32, #tpu.memory_space<smem>>
    %c36 = arith.constant 36 : index
    %148 = memref.load %arg2[%c36] : memref<64xf32, #tpu.memory_space<smem>>
    %c37 = arith.constant 37 : index
    %149 = memref.load %arg2[%c37] : memref<64xf32, #tpu.memory_space<smem>>
    %c38 = arith.constant 38 : index
    %150 = memref.load %arg2[%c38] : memref<64xf32, #tpu.memory_space<smem>>
    %c39 = arith.constant 39 : index
    %151 = memref.load %arg2[%c39] : memref<64xf32, #tpu.memory_space<smem>>
    %c40 = arith.constant 40 : index
    %152 = memref.load %arg2[%c40] : memref<64xf32, #tpu.memory_space<smem>>
    %c41 = arith.constant 41 : index
    %153 = memref.load %arg2[%c41] : memref<64xf32, #tpu.memory_space<smem>>
    %c42 = arith.constant 42 : index
    %154 = memref.load %arg2[%c42] : memref<64xf32, #tpu.memory_space<smem>>
    %c43 = arith.constant 43 : index
    %155 = memref.load %arg2[%c43] : memref<64xf32, #tpu.memory_space<smem>>
    %c44 = arith.constant 44 : index
    %156 = memref.load %arg2[%c44] : memref<64xf32, #tpu.memory_space<smem>>
    %c45 = arith.constant 45 : index
    %157 = memref.load %arg2[%c45] : memref<64xf32, #tpu.memory_space<smem>>
    %c46 = arith.constant 46 : index
    %158 = memref.load %arg2[%c46] : memref<64xf32, #tpu.memory_space<smem>>
    %c47 = arith.constant 47 : index
    %159 = memref.load %arg2[%c47] : memref<64xf32, #tpu.memory_space<smem>>
    %c8_i32 = arith.constant 8 : i32
    %160 = vector.broadcast %c8_i32 : i32 to vector<1x128xi32>
    %161 = arith.shrsi %0, %160 : vector<1x128xi32>
    %c1_i32_18 = arith.constant 1 : i32
    %162 = vector.broadcast %c1_i32_18 : i32 to vector<1x128xi32>
    %163 = arith.andi %161, %162 : vector<1x128xi32>
    %c1_i32_19 = arith.constant 1 : i32
    %164 = vector.broadcast %c1_i32_19 : i32 to vector<1x128xi32>
    %165 = arith.cmpi eq, %163, %164 : vector<1x128xi32>
    %166 = vector.broadcast %145 : f32 to vector<1x128xf32>
    %167 = vector.broadcast %144 : f32 to vector<1x128xf32>
    %168 = arith.select %165, %166, %167 : vector<1x128xi1>, vector<1x128xf32>
    %169 = vector.broadcast %147 : f32 to vector<1x128xf32>
    %170 = vector.broadcast %146 : f32 to vector<1x128xf32>
    %171 = arith.select %165, %169, %170 : vector<1x128xi1>, vector<1x128xf32>
    %172 = vector.broadcast %149 : f32 to vector<1x128xf32>
    %173 = vector.broadcast %148 : f32 to vector<1x128xf32>
    %174 = arith.select %165, %172, %173 : vector<1x128xi1>, vector<1x128xf32>
    %175 = vector.broadcast %151 : f32 to vector<1x128xf32>
    %176 = vector.broadcast %150 : f32 to vector<1x128xf32>
    %177 = arith.select %165, %175, %176 : vector<1x128xi1>, vector<1x128xf32>
    %178 = vector.broadcast %153 : f32 to vector<1x128xf32>
    %179 = vector.broadcast %152 : f32 to vector<1x128xf32>
    %180 = arith.select %165, %178, %179 : vector<1x128xi1>, vector<1x128xf32>
    %181 = vector.broadcast %155 : f32 to vector<1x128xf32>
    %182 = vector.broadcast %154 : f32 to vector<1x128xf32>
    %183 = arith.select %165, %181, %182 : vector<1x128xi1>, vector<1x128xf32>
    %184 = vector.broadcast %157 : f32 to vector<1x128xf32>
    %185 = vector.broadcast %156 : f32 to vector<1x128xf32>
    %186 = arith.select %165, %184, %185 : vector<1x128xi1>, vector<1x128xf32>
    %187 = vector.broadcast %159 : f32 to vector<1x128xf32>
    %188 = vector.broadcast %158 : f32 to vector<1x128xf32>
    %189 = arith.select %165, %187, %188 : vector<1x128xi1>, vector<1x128xf32>
    %c9_i32 = arith.constant 9 : i32
    %190 = vector.broadcast %c9_i32 : i32 to vector<1x128xi32>
    %191 = arith.shrsi %0, %190 : vector<1x128xi32>
    %c1_i32_20 = arith.constant 1 : i32
    %192 = vector.broadcast %c1_i32_20 : i32 to vector<1x128xi32>
    %193 = arith.andi %191, %192 : vector<1x128xi32>
    %c1_i32_21 = arith.constant 1 : i32
    %194 = vector.broadcast %c1_i32_21 : i32 to vector<1x128xi32>
    %195 = arith.cmpi eq, %193, %194 : vector<1x128xi32>
    %196 = arith.select %195, %171, %168 : vector<1x128xi1>, vector<1x128xf32>
    %197 = arith.select %195, %177, %174 : vector<1x128xi1>, vector<1x128xf32>
    %198 = arith.select %195, %183, %180 : vector<1x128xi1>, vector<1x128xf32>
    %199 = arith.select %195, %189, %186 : vector<1x128xi1>, vector<1x128xf32>
    %c10_i32 = arith.constant 10 : i32
    %200 = vector.broadcast %c10_i32 : i32 to vector<1x128xi32>
    %201 = arith.shrsi %0, %200 : vector<1x128xi32>
    %c1_i32_22 = arith.constant 1 : i32
    %202 = vector.broadcast %c1_i32_22 : i32 to vector<1x128xi32>
    %203 = arith.andi %201, %202 : vector<1x128xi32>
    %c1_i32_23 = arith.constant 1 : i32
    %204 = vector.broadcast %c1_i32_23 : i32 to vector<1x128xi32>
    %205 = arith.cmpi eq, %203, %204 : vector<1x128xi32>
    %206 = arith.select %205, %197, %196 : vector<1x128xi1>, vector<1x128xf32>
    %207 = arith.select %205, %199, %198 : vector<1x128xi1>, vector<1x128xf32>
    %c11_i32 = arith.constant 11 : i32
    %208 = vector.broadcast %c11_i32 : i32 to vector<1x128xi32>
    %209 = arith.shrsi %0, %208 : vector<1x128xi32>
    %c1_i32_24 = arith.constant 1 : i32
    %210 = vector.broadcast %c1_i32_24 : i32 to vector<1x128xi32>
    %211 = arith.andi %209, %210 : vector<1x128xi32>
    %c1_i32_25 = arith.constant 1 : i32
    %212 = vector.broadcast %c1_i32_25 : i32 to vector<1x128xi32>
    %213 = arith.cmpi eq, %211, %212 : vector<1x128xi32>
    %214 = arith.select %213, %207, %206 : vector<1x128xi1>, vector<1x128xf32>
    %215 = arith.addf %143, %214 : vector<1x128xf32>
    %c48 = arith.constant 48 : index
    %216 = memref.load %arg2[%c48] : memref<64xf32, #tpu.memory_space<smem>>
    %c49 = arith.constant 49 : index
    %217 = memref.load %arg2[%c49] : memref<64xf32, #tpu.memory_space<smem>>
    %c50 = arith.constant 50 : index
    %218 = memref.load %arg2[%c50] : memref<64xf32, #tpu.memory_space<smem>>
    %c51 = arith.constant 51 : index
    %219 = memref.load %arg2[%c51] : memref<64xf32, #tpu.memory_space<smem>>
    %c52 = arith.constant 52 : index
    %220 = memref.load %arg2[%c52] : memref<64xf32, #tpu.memory_space<smem>>
    %c53 = arith.constant 53 : index
    %221 = memref.load %arg2[%c53] : memref<64xf32, #tpu.memory_space<smem>>
    %c54 = arith.constant 54 : index
    %222 = memref.load %arg2[%c54] : memref<64xf32, #tpu.memory_space<smem>>
    %c55 = arith.constant 55 : index
    %223 = memref.load %arg2[%c55] : memref<64xf32, #tpu.memory_space<smem>>
    %c56 = arith.constant 56 : index
    %224 = memref.load %arg2[%c56] : memref<64xf32, #tpu.memory_space<smem>>
    %c57 = arith.constant 57 : index
    %225 = memref.load %arg2[%c57] : memref<64xf32, #tpu.memory_space<smem>>
    %c58 = arith.constant 58 : index
    %226 = memref.load %arg2[%c58] : memref<64xf32, #tpu.memory_space<smem>>
    %c59 = arith.constant 59 : index
    %227 = memref.load %arg2[%c59] : memref<64xf32, #tpu.memory_space<smem>>
    %c60 = arith.constant 60 : index
    %228 = memref.load %arg2[%c60] : memref<64xf32, #tpu.memory_space<smem>>
    %c61 = arith.constant 61 : index
    %229 = memref.load %arg2[%c61] : memref<64xf32, #tpu.memory_space<smem>>
    %c62 = arith.constant 62 : index
    %230 = memref.load %arg2[%c62] : memref<64xf32, #tpu.memory_space<smem>>
    %c63 = arith.constant 63 : index
    %231 = memref.load %arg2[%c63] : memref<64xf32, #tpu.memory_space<smem>>
    %c12_i32 = arith.constant 12 : i32
    %232 = vector.broadcast %c12_i32 : i32 to vector<1x128xi32>
    %233 = arith.shrsi %0, %232 : vector<1x128xi32>
    %c1_i32_26 = arith.constant 1 : i32
    %234 = vector.broadcast %c1_i32_26 : i32 to vector<1x128xi32>
    %235 = arith.andi %233, %234 : vector<1x128xi32>
    %c1_i32_27 = arith.constant 1 : i32
    %236 = vector.broadcast %c1_i32_27 : i32 to vector<1x128xi32>
    %237 = arith.cmpi eq, %235, %236 : vector<1x128xi32>
    %238 = vector.broadcast %217 : f32 to vector<1x128xf32>
    %239 = vector.broadcast %216 : f32 to vector<1x128xf32>
    %240 = arith.select %237, %238, %239 : vector<1x128xi1>, vector<1x128xf32>
    %241 = vector.broadcast %219 : f32 to vector<1x128xf32>
    %242 = vector.broadcast %218 : f32 to vector<1x128xf32>
    %243 = arith.select %237, %241, %242 : vector<1x128xi1>, vector<1x128xf32>
    %244 = vector.broadcast %221 : f32 to vector<1x128xf32>
    %245 = vector.broadcast %220 : f32 to vector<1x128xf32>
    %246 = arith.select %237, %244, %245 : vector<1x128xi1>, vector<1x128xf32>
    %247 = vector.broadcast %223 : f32 to vector<1x128xf32>
    %248 = vector.broadcast %222 : f32 to vector<1x128xf32>
    %249 = arith.select %237, %247, %248 : vector<1x128xi1>, vector<1x128xf32>
    %250 = vector.broadcast %225 : f32 to vector<1x128xf32>
    %251 = vector.broadcast %224 : f32 to vector<1x128xf32>
    %252 = arith.select %237, %250, %251 : vector<1x128xi1>, vector<1x128xf32>
    %253 = vector.broadcast %227 : f32 to vector<1x128xf32>
    %254 = vector.broadcast %226 : f32 to vector<1x128xf32>
    %255 = arith.select %237, %253, %254 : vector<1x128xi1>, vector<1x128xf32>
    %256 = vector.broadcast %229 : f32 to vector<1x128xf32>
    %257 = vector.broadcast %228 : f32 to vector<1x128xf32>
    %258 = arith.select %237, %256, %257 : vector<1x128xi1>, vector<1x128xf32>
    %259 = vector.broadcast %231 : f32 to vector<1x128xf32>
    %260 = vector.broadcast %230 : f32 to vector<1x128xf32>
    %261 = arith.select %237, %259, %260 : vector<1x128xi1>, vector<1x128xf32>
    %c13_i32 = arith.constant 13 : i32
    %262 = vector.broadcast %c13_i32 : i32 to vector<1x128xi32>
    %263 = arith.shrsi %0, %262 : vector<1x128xi32>
    %c1_i32_28 = arith.constant 1 : i32
    %264 = vector.broadcast %c1_i32_28 : i32 to vector<1x128xi32>
    %265 = arith.andi %263, %264 : vector<1x128xi32>
    %c1_i32_29 = arith.constant 1 : i32
    %266 = vector.broadcast %c1_i32_29 : i32 to vector<1x128xi32>
    %267 = arith.cmpi eq, %265, %266 : vector<1x128xi32>
    %268 = arith.select %267, %243, %240 : vector<1x128xi1>, vector<1x128xf32>
    %269 = arith.select %267, %249, %246 : vector<1x128xi1>, vector<1x128xf32>
    %270 = arith.select %267, %255, %252 : vector<1x128xi1>, vector<1x128xf32>
    %271 = arith.select %267, %261, %258 : vector<1x128xi1>, vector<1x128xf32>
    %c14_i32 = arith.constant 14 : i32
    %272 = vector.broadcast %c14_i32 : i32 to vector<1x128xi32>
    %273 = arith.shrsi %0, %272 : vector<1x128xi32>
    %c1_i32_30 = arith.constant 1 : i32
    %274 = vector.broadcast %c1_i32_30 : i32 to vector<1x128xi32>
    %275 = arith.andi %273, %274 : vector<1x128xi32>
    %c1_i32_31 = arith.constant 1 : i32
    %276 = vector.broadcast %c1_i32_31 : i32 to vector<1x128xi32>
    %277 = arith.cmpi eq, %275, %276 : vector<1x128xi32>
    %278 = arith.select %277, %269, %268 : vector<1x128xi1>, vector<1x128xf32>
    %279 = arith.select %277, %271, %270 : vector<1x128xi1>, vector<1x128xf32>
    %c15_i32 = arith.constant 15 : i32
    %280 = vector.broadcast %c15_i32 : i32 to vector<1x128xi32>
    %281 = arith.shrsi %0, %280 : vector<1x128xi32>
    %c1_i32_32 = arith.constant 1 : i32
    %282 = vector.broadcast %c1_i32_32 : i32 to vector<1x128xi32>
    %283 = arith.andi %281, %282 : vector<1x128xi32>
    %c1_i32_33 = arith.constant 1 : i32
    %284 = vector.broadcast %c1_i32_33 : i32 to vector<1x128xi32>
    %285 = arith.cmpi eq, %283, %284 : vector<1x128xi32>
    %286 = arith.select %285, %279, %278 : vector<1x128xi1>, vector<1x128xf32>
    %287 = arith.addf %215, %286 : vector<1x128xf32>
    %c0_34 = arith.constant 0 : index
    %288 = memref.load %arg3[%c0_34] : memref<1xf32, #tpu.memory_space<smem>>
    %289 = vector.broadcast %288 : f32 to vector<1x128xf32>
    %290 = arith.addf %287, %289 : vector<1x128xf32>
    %c0_35 = arith.constant 0 : index
    %c0_36 = arith.constant 0 : index
    %291 = vector.load %arg4[%c0_35, %c0_36] : memref<1x128xf32, #tpu.memory_space<vmem>>, vector<1x128xf32>
    tpu.vector_store %arg4[%c0_35, %c0_36], %290 {strides = array<i32>} : memref<1x128xf32, #tpu.memory_space<vmem>>, vector<1x128xf32>,
    return
  }
  func.func @transform_0(%arg0: i32) -> (i32, i32) {
    %c0_i32 = arith.constant 0 : i32
    %c0_i32_0 = arith.constant 0 : i32
    return %arg0, %c0_i32 : i32, i32
  }
  func.func @transform_1(%arg0: i32) -> i32 {
    %c0_i32 = arith.constant 0 : i32
    %c0_i32_0 = arith.constant 0 : i32
    return %c0_i32 : i32
  }
  func.func @transform_2(%arg0: i32) -> i32 {
    %c0_i32 = arith.constant 0 : i32
    %c0_i32_0 = arith.constant 0 : i32
    return %c0_i32 : i32
  }
  func.func @transform_3(%arg0: i32) -> (i32, i32) {
    %c0_i32 = arith.constant 0 : i32
    %c0_i32_0 = arith.constant 0 : i32
    return %arg0, %c0_i32 : i32, i32
  }
}

</mosaic_0001>

<bundles_post_ra>
// kernel: tpu_custom_call.1
= control target key start
LH: loop header
LB: loop body
LE: loop exit
PB: predicated region body
PF: predicated region fallthrough
CT: control target
= control target key end

     0   :  { %s787_s0 = inlined_call_operand.vmem [shape: s32[1,128], index: 0, kind: input, shape index: {}]   ;;  %s788_s1 = inlined_call_operand.vmem [shape: f32[64], index: 1, kind: input, shape index: {}]   ;;  %s789_s2 = inlined_call_operand.<no memory space> [shape: f32[1], index: 2, kind: input, shape index: {}]   ;;  %s790_s3 = inlined_call_operand.hbm [shape: f32[1,128], index: 3, kind: output, shape index: {}]  }
   0x1   :  { %791 = sst [smem:[#allocation11_spill]] %s789_s2 }
   0x2   :  { %792 = sst [smem:[#allocation12_spill]] %s790_s3 }
   0x3   :  { %9 = vsyncpa [#allocation5], 0 }
   0x4   :  { %10 = vsyncpa [#allocation4], 0  ;;  %s18_s14 = sshll.u32 %s788_s1, 4  ;;  %s394_s15 = smov [#allocation3]   ;;  %s19_s14 = int_to_ptr.vmem [resolvable:$true] %s18_s14 }
   0x5   :  { %21 = dma.vmem_to_smem %s19_s14, 16, %s394_s15, [#allocation5]  }
   0x6   :  { %390 = dma.done.wait [#allocation5], 16  }
   0x7   :  { %391 = vsyncadd [#allocation5], 4294967280 }
   0x8   :  { %28 = sfence }
   0x9   :  { %s419_s16 = sld [smem:[#allocation3]]  ;;  %v468_v0 = vld [vmem:[%s787_s0] sm:$0x1] }
   0xa   :  { %s421_s17 = sld [smem:[#allocation3 + $0x1]]  ;;  %v46_v1 = vand.u32 1, %v468_v0  ;;  %v72_v2 = vshra.s32 %v468_v0, 1  ;;  %v79_v3 = vshra.s32 %v468_v0, 2  ;;  %v84_v4 = vshra.s32 %v468_v0, 3 }
   0xb   :  { %s423_s18 = sld [smem:[#allocation3 + $0x2]]  ;;  %v104_v5 = vshra.s32 %v468_v0, 4  ;;  %v131_v6 = vshra.s32 %v468_v0, 5  ;;  %v138_v21 = vshra.s32 %v468_v0, 6  ;;  %v143_v23 = vshra.s32 %v468_v0, 7 }
   0xc   :  { %s425_s19 = sld [smem:[#allocation3 + $0x3]]  ;;  %vm490_vm0 = vcmp.eq.s32.totalorder %v46_v1, 1  ;;  %v494_v8 = vand.u32 1, %v72_v2  ;;  %v496_v9 = vand.u32 1, %v79_v3  ;;  %v512_v18 = vand.u32 1, %v84_v4 }
   0xd   :  { %s427_s20 = sld [smem:[#allocation3 + $0x4]]  ;;  %v514_v19 = vand.u32 1, %v104_v5  ;;  %v516_v20 = vand.u32 1, %v131_v6  ;;  %v164_v27 = vshra.s32 %v468_v0, 8  ;;  %v553_v37 = vand.u32 1, %v138_v21 }
   0xe   :  { %s429_s21 = sld [smem:[#allocation3 + $0x5]]  ;;  %vm74_vm1 = vcmp.eq.s32.totalorder %v494_v8, 1  ;;  %vm81_vm2 = vcmp.eq.s32.totalorder %v496_v9, 1  ;;  %v191_v41 = vshra.s32 %v468_v0, 9  ;;  %v198_v45 = vshra.s32 %v468_v0, 10 }
   0xf   :  { %s431_s22 = sld [smem:[#allocation3 + $0x6]]  ;;  %v49_v11 = vstv %s419_s16  ;;  %vm106_vm3 = vcmp.eq.s32.totalorder %v514_v19, 1  ;;  %vm133_vm4 = vcmp.eq.s32.totalorder %v516_v20, 1  ;;  %v563_v40 = vand.u32 1, %v164_v27 }
  0x10   :  { %s433_s1 = sld [smem:[#allocation3 + $0x7]]  ;;  %v48_v10 = vstv %s421_s17  ;;  %v593_v56 = vand.u32 1, %v143_v23  ;;  %v597_v57 = vand.u32 1, %v191_v41  ;;  %v606_v60 = vand.u32 1, %v198_v45 }
  0x11   :  { %s435_s23 = sld [smem:[#allocation3 + $0x8]]  ;;  %v52_v13 = vstv %s423_s18  ;;  %v50_v22 = vsel %vm490_vm0, %v48_v10, %v49_v11  ;;  %vm166_vm5 = vcmp.eq.s32.totalorder %v563_v40, 1  ;;  %v203_v61 = vshra.s32 %v468_v0, 11 }
  0x12   :  { %s437_s24 = sld [smem:[#allocation3 + $0x9]]  ;;  %v51_v12 = vstv %s425_s19  ;;  %v224_v2 = vshra.s32 %v468_v0, 12  ;;  %vm140_vm6 = vcmp.eq.s32.totalorder %v553_v37, 1  ;;  %vm193_vm7 = vcmp.eq.s32.totalorder %v597_v57, 1 }
  0x13   :  { %s439_s25 = sld [smem:[#allocation3 + $0xa]]  ;;  %v55_v15 = vstv %s427_s20  ;;  %v53_v24 = vsel %vm490_vm0, %v51_v12, %v52_v13  ;;  %v251_v23 = vshra.s32 %v468_v0, 13  ;;  %vm86_vm8 = vcmp.eq.s32.totalorder %v512_v18, 1 }
  0x14   :  { %s441_s26 = sld [smem:[#allocation3 + $0xb]]  ;;  %v54_v14 = vstv %s429_s21  ;;  %v75_v36 = vsel %vm74_vm1, %v53_v24, %v50_v22  ;;  %v258_v24 = vshra.s32 %v468_v0, 14  ;;  %vm145_vm9 = vcmp.eq.s32.totalorder %v593_v56, 1 }
  0x15   :  { %s443_s27 = sld [smem:[#allocation3 + $0xc]]  ;;  %v58_v17 = vstv %s431_s22  ;;  %v56_v25 = vsel %vm490_vm0, %v54_v14, %v55_v15  ;;  %v638_v14 = vand.u32 1, %v203_v61  ;;  %vm200_vm10 = vcmp.eq.s32.totalorder %v606_v60, 1 }
  0x16   :  { %s445_s28 = sld [smem:[#allocation3 + $0xd]]  ;;  %v57_v16 = vstv %s433_s1  ;;  %v263_v40 = vshra.s32 %v468_v0, 15 }
  0x17   :  { %s447_s29 = sld [smem:[#allocation3 + $0xe]]  ;;  %v59_v26 = vsel %vm490_vm0, %v57_v16, %v58_v17  ;;  %v61_v29 = vstv %s435_s23  ;;  %v650_v17 = vand.u32 1, %v224_v2  ;;  %vm205_vm11 = vcmp.eq.s32.totalorder %v638_v14, 1 }
  0x18   :  { %s449_s30 = sld [smem:[#allocation3 + $0xf]]  ;;  %v60_v28 = vstv %s437_s24  ;;  %v76_v39 = vsel %vm74_vm1, %v59_v26, %v56_v25  ;;  %v264_v60 = vand.u32 1, %v263_v40 }
  0x19   :  { %s451_s4 = sld [smem:[#allocation3 + $0x10]]  ;;  %v64_v31 = vstv %s439_s25  ;;  %v62_v38 = vsel %vm490_vm0, %v60_v28, %v61_v29  ;;  %v591_v55 = vsel %vm81_vm2, %v76_v39, %v75_v36  ;;  %vm226_vm12 = vcmp.eq.s32.totalorder %v650_v17, 1 }
  0x1a   :  { %s453_s5 = sld [smem:[#allocation3 + $0x11]]  ;;  %v63_v30 = vstv %s441_s26  ;;  %vm265_vm15 = vcmp.eq.s32.totalorder %v264_v60, 1 }
  0x1b   :  { %s455_s6 = sld [smem:[#allocation3 + $0x12]]  ;;  %v67_v33 = vstv %s443_s27  ;;  %v65_v42 = vsel %vm490_vm0, %v63_v30, %v64_v31 }
  0x1c   :  { %s457_s7 = sld [smem:[#allocation3 + $0x13]]  ;;  %v66_v32 = vstv %s445_s28  ;;  %v77_v54 = vsel %vm74_vm1, %v65_v42, %v62_v38 }
  0x1d   :  { %s459_s8 = sld [smem:[#allocation3 + $0x14]]  ;;  %v70_v35 = vstv %s447_s29  ;;  %v68_v43 = vsel %vm490_vm0, %v66_v32, %v67_v33 }
  0x1e   :  { %s461_s9 = sld [smem:[#allocation3 + $0x15]]  ;;  %v69_v34 = vstv %s449_s30 }
  0x1f   :  { %s463_s10 = sld [smem:[#allocation3 + $0x16]]  ;;  %v71_v44 = vsel %vm490_vm0, %v69_v34, %v70_v35  ;;  %v108_v47 = vstv %s451_s4 }
  0x20   :  { %s470_s13 = sld [smem:[#allocation3 + $0x17]]  ;;  %v107_v46 = vstv %s453_s5  ;;  %v78_v58 = vsel %vm74_vm1, %v71_v44, %v68_v43 }
  0x21   :  { %s472_s14 = sld [smem:[#allocation3 + $0x18]]  ;;  %v111_v49 = vstv %s455_s6  ;;  %v109_v59 = vsel %vm106_vm3, %v107_v46, %v108_v47  ;;  %v633_v12 = vsel %vm81_vm2, %v78_v58, %v77_v54  ;;  %v259_v54 = vand.u32 1, %v258_v24 }
  0x22   :  { %s474_s15 = sld [smem:[#allocation3 + $0x19]]  ;;  %v110_v48 = vstv %s457_s7  ;;  %v87_v57 = vsel %vm86_vm8, %v633_v12, %v591_v55 }
  0x23   :  { %s479_s3 = sld [smem:[#allocation3 + $0x1a]]  ;;  %v114_v51 = vstv %s459_s8  ;;  %v112_v62 = vsel %vm106_vm3, %v110_v48, %v111_v49  ;;  %vm260_vm14 = vcmp.eq.s32.totalorder %v259_v54, 1 }
  0x24   :  { %s481_s0 = sld [smem:[#allocation3 + $0x1b]]  ;;  %v113_v50 = vstv %s461_s9  ;;  %v134_v13 = vsel %vm133_vm4, %v112_v62, %v109_v59 }
  0x25   :  { %s483_s11 = sld [smem:[#allocation3 + $0x1c]]  ;;  %v117_v53 = vstv %s463_s10  ;;  %v115_v63 = vsel %vm106_vm3, %v113_v50, %v114_v51 }
  0x26   :  { %s486_s12 = sld [smem:[#allocation3 + $0x1d]]  ;;  %v116_v52 = vstv %s470_s13 }
  0x27   :  { %s498_s2 = sld [smem:[#allocation3 + $0x1e]]  ;;  %v118_v1 = vsel %vm106_vm3, %v116_v52, %v117_v53  ;;  %v120_v4 = vstv %s472_s14  ;;  %v252_v53 = vand.u32 1, %v251_v23 }
  0x28   :  { %s519_s16 = sld [smem:[#allocation3 + $0x21]]  ;;  %v119_v3 = vstv %s474_s15  ;;  %v135_v16 = vsel %vm133_vm4, %v118_v1, %v115_v63 }
  0x29   :  { %s526_s17 = sld [smem:[#allocation3 + $0x22]]  ;;  %v123_v6 = vstv %s479_s3  ;;  %v121_v15 = vsel %vm106_vm3, %v119_v3, %v120_v4  ;;  %v141_v49 = vsel %vm140_vm6, %v135_v16, %v134_v13  ;;  %vm253_vm13 = vcmp.eq.s32.totalorder %v252_v53, 1 }
  0x2a   :  { %s534_s18 = sld [smem:[#allocation3 + $0x23]]  ;;  %v122_v5 = vstv %s481_s0 }
  0x2b   :  { %793 = sst [smem:[#allocation9_spill]] %s483_s11  ;;  %v124_v9 = vsel %vm106_vm3, %v122_v5, %v123_v6 }
  0x2c   :  { %794 = sst [smem:[#allocation10_spill]] %s486_s12  ;;  %v136_v42 = vsel %vm133_vm4, %v124_v9, %v121_v15 }
  0x2d   :  { %s504_s11 = sld [smem:[#allocation3 + $0x1f]]  ;;  %v129_v11 = vstv %s498_s2 }
  0x2e   :  { %s510_s12 = sld [smem:[#allocation3 + $0x20]]  ;;  %v167_v25 = vstv %s519_s16 }
  0x2f   :  { %s541_s19 = sld [smem:[#allocation3 + $0x24]]  ;;  %v171_v27 = vstv %s526_s17 }
  0x30   :  { %s547_s20 = sld [smem:[#allocation3 + $0x25]]  ;;  %v170_v19 = vstv %s534_s18 }
  0x31   :  { %s555_s21 = sld [smem:[#allocation3 + $0x26]]  ;;  %v172_v45 = vsel %vm166_vm5, %v170_v19, %v171_v27 }
  0x32   :  { %s561_s22 = sld [smem:[#allocation3 + $0x27]] }
  0x33   :  { %s572_s1 = sld [smem:[#allocation3 + $0x28]]  ;;  %v128_v10 = vstv %s504_s11 }
  0x34   :  { %s579_s23 = sld [smem:[#allocation3 + $0x29]]  ;;  %v130_v22 = vsel %vm106_vm3, %v128_v10, %v129_v11  ;;  %v168_v26 = vstv %s510_s12 }
  0x35   :  { %s585_s24 = sld [smem:[#allocation3 + $0x2a]]  ;;  %v174_v29 = vstv %s541_s19  ;;  %v169_v44 = vsel %vm166_vm5, %v167_v25, %v168_v26 }
  0x36   :  { %s595_s25 = sld [smem:[#allocation3 + $0x2b]]  ;;  %v173_v28 = vstv %s547_s20  ;;  %v194_v58 = vsel %vm193_vm7, %v172_v45, %v169_v44 }
  0x37   :  { %s797_s26 = sld [smem:[#allocation10_spill]]  ;;  %v177_v31 = vstv %s555_s21  ;;  %v175_v46 = vsel %vm166_vm5, %v173_v28, %v174_v29  ;;  %s395_s21 = smov [#allocation6]  }
  0x38   :  { %s603_s27 = sld [smem:[#allocation3 + $0x2c]]  ;;  %v176_v30 = vstv %s561_s22  ;;  %s277_s22 = sshll.u32 %s395_s21, 4  ;;  %s278_s22 = int_to_ptr.vmem [resolvable:$true] %s277_s22 }
  0x39   :  { %s798_s28 = sld [smem:[#allocation9_spill]]  ;;  %v180_v33 = vstv %s572_s1  ;;  %v178_v47 = vsel %vm166_vm5, %v176_v30, %v177_v31 }
  0x3a   :  { %s615_s29 = sld [smem:[#allocation3 + $0x2d]]  ;;  %v179_v32 = vstv %s579_s23  ;;  %v195_v59 = vsel %vm193_vm7, %v178_v47, %v175_v46 }
  0x3b   :  { %s623_s30 = sld [smem:[#allocation3 + $0x2e]]  ;;  %v183_v35 = vstv %s585_s24  ;;  %v181_v48 = vsel %vm166_vm5, %v179_v32, %v180_v33 }
  0x3c   :  { %s629_s4 = sld [smem:[#allocation3 + $0x2f]]  ;;  %v182_v34 = vstv %s595_s25 }
  0x3d   :  { %v125_v7 = vstv %s797_s26  ;;  %s640_s3 = sld [smem:[#allocation3 + $0x30]]  ;;  %v184_v20 = vsel %vm166_vm5, %v182_v34, %v183_v35 }
  0x3e   :  { %s648_s2 = sld [smem:[#allocation3 + $0x31]]  ;;  %v186_v38 = vstv %s603_s27  ;;  %v196_v37 = vsel %vm193_vm7, %v184_v20, %v181_v48 }
  0x3f   :  { %v126_v8 = vstv %s798_s28  ;;  %s656_s5 = sld [smem:[#allocation3 + $0x32]] }
  0x40   :  { %v127_v21 = vsel %vm106_vm3, %v125_v7, %v126_v8  ;;  %s667_s6 = sld [smem:[#allocation3 + $0x33]]  ;;  %v185_v36 = vstv %s615_s29  ;;  %v201_v7 = vsel %vm200_vm10, %v195_v59, %v194_v58 }
  0x41   :  { %s673_s7 = sld [smem:[#allocation3 + $0x34]]  ;;  %v189_v41 = vstv %s623_s30  ;;  %v137_v43 = vsel %vm133_vm4, %v130_v22, %v127_v21  ;;  %v187_v50 = vsel %vm166_vm5, %v185_v36, %v186_v38 }
  0x42   :  { %s679_s8 = sld [smem:[#allocation3 + $0x35]]  ;;  %v188_v39 = vstv %s629_s4  ;;  %v142_v52 = vsel %vm140_vm6, %v137_v43, %v136_v42 }
  0x43   :  { %s685_s9 = sld [smem:[#allocation3 + $0x36]]  ;;  %v190_v51 = vsel %vm166_vm5, %v188_v39, %v189_v41  ;;  %v228_v61 = vstv %s640_s3  ;;  %v146_v6 = vsel %vm145_vm9, %v142_v52, %v141_v49 }
  0x44   :  { %s695_s10 = sld [smem:[#allocation3 + $0x37]]  ;;  %v197_v62 = vsel %vm193_vm7, %v190_v51, %v187_v50  ;;  %v227_v63 = vstv %s648_s2  ;;  %v147_v9 = vadd.f32 %v146_v6, %v87_v57 }
  0x45   :  { %s706_s13 = sld [smem:[#allocation3 + $0x38]]  ;;  %v231_v1 = vstv %s656_s5  ;;  %v202_v8 = vsel %vm200_vm10, %v197_v62, %v196_v37  ;;  %v229_v10 = vsel %vm226_vm12, %v227_v63, %v228_v61 }
  0x46   :  { %s714_s14 = sld [smem:[#allocation3 + $0x39]]  ;;  %v230_v0 = vstv %s667_s6  ;;  %v206_v23 = vsel %vm205_vm11, %v202_v8, %v201_v7 }
  0x47   :  { %s719_s15 = sld [smem:[#allocation3 + $0x3a]]  ;;  %v234_v3 = vstv %s673_s7  ;;  %v232_v18 = vsel %vm226_vm12, %v230_v0, %v231_v1  ;;  %v207_v30 = vadd.f32 %v206_v23, %v147_v9 }
  0x48   :  { %s728_s0 = sld [smem:[#allocation3 + $0x3b]]  ;;  %v233_v2 = vstv %s679_s8  ;;  %v254_v25 = vsel %vm253_vm13, %v232_v18, %v229_v10 }
  0x49   :  { %s733_s11 = sld [smem:[#allocation3 + $0x3c]]  ;;  %v237_v5 = vstv %s685_s9  ;;  %v235_v55 = vsel %vm226_vm12, %v233_v2, %v234_v3 }
  0x4a   :  { %s349_s12 = sld [smem:[#allocation3 + $0x3d]]  ;;  %v236_v4 = vstv %s695_s10 }
  0x4b   :  { %s350_s16 = sld [smem:[#allocation3 + $0x3e]]  ;;  %v240_v13 = vstv %s706_s13  ;;  %v238_v56 = vsel %vm226_vm12, %v236_v4, %v237_v5 }
  0x4c   :  { %s351_s17 = sld [smem:[#allocation3 + $0x3f]]  ;;  %v239_v11 = vstv %s714_s14  ;;  %v255_v26 = vsel %vm253_vm13, %v238_v56, %v235_v55 }
  0x4d   :  { %v243_v12 = vstv %s719_s15  ;;  %v241_v16 = vsel %vm226_vm12, %v239_v11, %v240_v13  ;;  %v261_v32 = vsel %vm260_vm14, %v255_v26, %v254_v25  ;;  %s799_s20 = sld [smem:[#allocation11_spill]] }
  0x4e   :  { %v242_v15 = vstv %s728_s0  ;;  %s800_s24 = sld [smem:[#allocation12_spill]] }
  0x4f   :  { %v244_v21 = vsel %vm226_vm12, %v242_v15, %v243_v12  ;;  %v246_v22 = vstv %s733_s11 }
  0x50   :  { %v245_v24 = vstv %s349_s12  ;;  %v256_v29 = vsel %vm253_vm13, %v244_v21, %v241_v16 }
  0x51   :  { %v247_v19 = vsel %vm226_vm12, %v245_v24, %v246_v22  ;;  %v249_v27 = vstv %s350_s16 }
  0x52   :  { %v248_v28 = vstv %s351_s17 }
  0x53   :  { %v250_v31 = vsel %vm226_vm12, %v248_v28, %v249_v27  ;;  %v269_v35 = vstv %s799_s20 }
  0x54   :  { %v257_v14 = vsel %vm253_vm13, %v250_v31, %v247_v19  ;;  %s279_s25 = sshll.u32 %s800_s24, 4  ;;  %s280_s25 = int_to_ptr.hbm [resolvable:$true] %s279_s25 }
  0x55   :  { %v262_v33 = vsel %vm260_vm14, %v257_v14, %v256_v29 }
  0x56   :  { %v266_v34 = vsel %vm265_vm15, %v262_v33, %v261_v32 }
  0x57   :  { %v267_v17 = vadd.f32 %v266_v34, %v207_v30 }
  0x59   :  { %v270_v36 = vadd.f32 %v269_v35, %v267_v17 }
  0x5b   :  { %271 = vst [vmem:[#allocation6] sm:$0x1] %v270_v36 }
  0x5c   :  { %282 = dma.vmem_to_hbm [thread:$0]  %s278_s22, 16, %s280_s25, [#allocation4]  }
  0x5d   :  { %392 = dma.done.wait [#allocation4], 16  }
  0x5e   :  { %393 = vsyncadd [#allocation4], 4294967280 }
  0x5f   :  { %287 = vsyncpa [#allocation4], 1 }
  0x60   :  { %288 = vsyncpa [#allocation5], 1 }

</bundles_post_ra>
